<compile_context>
chip_gen: v7x
topology: tpu7x:2x2x1
jax: 0.10.0
libtpu: 0.0.40
codegen_flags: <defaults>
</compile_context>

<pallas_src>
import numpy as np
import jax
import jax.numpy as jnp
from jax import lax
from jax.experimental import pallas as pl
from jax.experimental.pallas import tpu as pltpu

F32 = jnp.float32


def _sigmoid(x):
    return 1.0 / (1.0 + jnp.exp(-x))


# ----------------------------------------------------------------------------
# Small structure matrices (host-side NumPy): bilinear interp, 2x2-s2 taps
# ----------------------------------------------------------------------------
def _interp_matrix(n_in):
    """(2*n_in, n_in) matrix for PyTorch bilinear x2, align_corners=False."""
    n_out = 2 * n_in
    A = np.zeros((n_out, n_in), dtype=np.float32)
    for i in range(n_out):
        src = max((i + 0.5) * 0.5 - 0.5, 0.0)
        i0 = min(int(np.floor(src)), n_in - 1)
        i1 = min(i0 + 1, n_in - 1)
        lam = src - i0
        A[i, i0] += 1.0 - lam
        A[i, i1] += lam
    return A


def _tap_matrices(h_out, w_out):
    """Selection matrices for the 4 taps of a 2x2/stride-2 conv.

    tap_k = A[k] @ plane @ Bm[k] picks plane[2h+dy, 2w+dx], with k = 2*dy + dx
    (kh-major, kw-minor -- matches a torch (O, I, 2, 2) weight flattened as
    W2d[o, k*I + i] = w[o, i, dy, dx]).
    """
    A = np.zeros((4, h_out, 2 * h_out), dtype=np.float32)
    Bm = np.zeros((4, 2 * w_out, w_out), dtype=np.float32)
    for dy in (0, 1):
        for dx in (0, 1):
            k = 2 * dy + dx
            for h in range(h_out):
                A[k, h, 2 * h + dy] = 1.0
            for w in range(w_out):
                Bm[k, 2 * w + dx, w] = 1.0
    return A, Bm


# ----------------------------------------------------------------------------
# Kernel 1: per-batch spatial transform  out[b,k,c] = A[k] @ x[b,c] @ B[k]
#   (used for the separable bilinear upsample and for 2x2-s2 tap extraction)
# ----------------------------------------------------------------------------
def _spatial_transform_kernel(x_ref, a_ref, b_ref, o_ref):
    K = a_ref.shape[0]
    C = x_ref.shape[1]
    for k in range(K):
        a = a_ref[k]
        bm = b_ref[k]
        for c in range(C):
            t = jnp.dot(a, x_ref[0, c], preferred_element_type=jnp.float32)
            o_ref[0, k, c] = jnp.dot(t, bm, preferred_element_type=jnp.float32)


def _spatial_transform(x4d, A, Bm):
    """x4d (B, C, Hin, Win); A (K, Hout, Hin); Bm (K, Win, Wout)."""
    Bn, C, Hin, Win = x4d.shape
    K, Hout, _ = A.shape
    Wout = Bm.shape[2]
    out = pl.pallas_call(
        _spatial_transform_kernel,
        out_shape=jax.ShapeDtypeStruct((Bn, K, C, Hout, Wout), F32),
        grid=(Bn,),
        in_specs=[
            pl.BlockSpec((1, C, Hin, Win), lambda b: (b, 0, 0, 0)),
            pl.BlockSpec((K, Hout, Hin), lambda b: (0, 0, 0)),
            pl.BlockSpec((K, Win, Wout), lambda b: (0, 0, 0)),
        ],
        out_specs=pl.BlockSpec((1, K, C, Hout, Wout),
                               lambda b: (b, 0, 0, 0, 0)),
        compiler_params=pltpu.CompilerParams(
            dimension_semantics=("parallel",)),
    )(x4d, jnp.asarray(A), jnp.asarray(Bm))
    # free (contiguous) reshape: channel index becomes k*C + c, spatial flattened
    return out.reshape(Bn, K * C, Hout * Wout)


# ----------------------------------------------------------------------------
# Shared in-kernel helpers (channels-first tiles: (C, tp) with P on lanes)
# ----------------------------------------------------------------------------
def _up_tile(upr, wu, bu):
    # up_conv1 (1x1) commuted past the (already applied) bilinear upsample
    return jnp.dot(wu, upr, preferred_element_type=jnp.float32) + bu


def _down_tile(taps, wd1, bd1, wd2, bd2):
    d = jnp.dot(wd1, taps, preferred_element_type=jnp.float32) + bd1      # 2x2 s2
    return jnp.dot(wd2, d, preferred_element_type=jnp.float32) + bd2      # 1x1


def _accum_gate(gate_ref, lo, hi, wca_ref, bca_ref):
    """Cross-tile global-average-pool accumulation + CA/SA gate finalize.

    gate_ref is a revisited (1, 2C, 1) output block along the innermost
    ("arbitrary") grid axis.  After the last tile it holds sigmoid(Wca@m+bca)
    + sigmoid(m) where m is the spatial mean of [lo, hi].
    """
    i = pl.program_id(1)
    nt = pl.num_programs(1)
    tp = lo.shape[1]

    @pl.when(i == 0)
    def _():
        gate_ref[...] = jnp.zeros(gate_ref.shape, gate_ref.dtype)

    s = jnp.concatenate(
        [jnp.sum(lo, axis=1, keepdims=True),
         jnp.sum(hi, axis=1, keepdims=True)], axis=0)                     # (2C,1)
    gate_ref[0] = gate_ref[0] + s

    @pl.when(i == nt - 1)
    def _():
        m = gate_ref[0] * (1.0 / (tp * nt))                               # mean
        ca = _sigmoid(jnp.dot(wca_ref[...], m,
                              preferred_element_type=jnp.float32) + bca_ref[...])
        gate_ref[0] = ca + _sigmoid(m)


# ----------------------------------------------------------------------------
# Phase-1 ("fuse") kernels: cross-level mix + partial reduction for the gates
# ----------------------------------------------------------------------------
def pff2pre_fuse_kernel(cur_ref, upr_ref, wu_ref, bu_ref, wca_ref, bca_ref,
                        mul_ref, gate_ref):
    cur = cur_ref[0]
    up = _up_tile(upr_ref[0], wu_ref[...], bu_ref[...])
    mul = cur * up
    mul_ref[0] = mul
    _accum_gate(gate_ref, cur, mul, wca_ref, bca_ref)


def pff2nex_fuse_kernel(cur_ref, taps_ref, wd1_ref, bd1_ref, wd2_ref, bd2_ref,
                        wca_ref, bca_ref, mul_ref, gate_ref):
    cur = cur_ref[0]
    down = _down_tile(taps_ref[0], wd1_ref[...], bd1_ref[...],
                      wd2_ref[...], bd2_ref[...])
    mul = down * cur
    mul_ref[0] = mul
    _accum_gate(gate_ref, cur, mul, wca_ref, bca_ref)


def pff3_fuse_kernel(cur_ref, upr_ref, taps_ref,
                     wd1_ref, bd1_ref, wd2_ref, bd2_ref, wu_ref, bu_ref,
                     wca_ref, bca_ref, mull_ref, mulh_ref, gate_ref):
    cur = cur_ref[0]
    down = _down_tile(taps_ref[0], wd1_ref[...], bd1_ref[...],
                      wd2_ref[...], bd2_ref[...])
    up = _up_tile(upr_ref[0], wu_ref[...], bu_ref[...])
    mul_low = down * cur
    mul_high = up * cur
    mull_ref[0] = mul_low
    mulh_ref[0] = mul_high
    _accum_gate(gate_ref, mul_low, mul_high, wca_ref, bca_ref)


# ----------------------------------------------------------------------------
# Phase-2 ("attend") kernel: DAB gates + pa conv + final 1x1 conv + ReLU
#   (cc = [lo, hi] is never concatenated; weights arrive pre-split)
# ----------------------------------------------------------------------------
def attend_kernel(lo_ref, hi_ref, glo_ref, ghi_ref,
                  wpa_ll_ref, wpa_lh_ref, wpa_hl_ref, wpa_hh_ref,
                  bpa_lo_ref, bpa_hi_ref,
                  wf_l_ref, wf_h_ref, bf_ref, out_ref):
    lo = lo_ref[0]
    hi = hi_ref[0]
    pa_lo = _sigmoid(
        jnp.dot(wpa_ll_ref[...], lo, preferred_element_type=jnp.float32)
        + jnp.dot(wpa_lh_ref[...], hi, preferred_element_type=jnp.float32)
        + bpa_lo_ref[...])
    pa_hi = _sigmoid(
        jnp.dot(wpa_hl_ref[...], lo, preferred_element_type=jnp.float32)
        + jnp.dot(wpa_hh_ref[...], hi, preferred_element_type=jnp.float32)
        + bpa_hi_ref[...])
    att_lo = lo * (glo_ref[0] + pa_lo)        # CA + SA + PA, lower half
    att_hi = hi * (ghi_ref[0] + pa_hi)        # CA + SA + PA, upper half
    out = (jnp.dot(wf_l_ref[...], att_lo, preferred_element_type=jnp.float32)
           + jnp.dot(wf_h_ref[...], att_hi, preferred_element_type=jnp.float32)
           + bf_ref[...])
    out_ref[0] = jnp.maximum(out, 0.0)        # LeakyReLU(negative_slope=0.0)


# ----------------------------------------------------------------------------
# pallas_call wrappers (grid = (batch, spatial tiles))
# ----------------------------------------------------------------------------
def _pick_tp(P, tile_lanes):
    """Largest 128-multiple tile that divides P (or the whole P when small)."""
    if P <= tile_lanes or P <= 128:
        return P
    t = (tile_lanes // 128) * 128
    while t >= 128:
        if P % t == 0:
            return t
        t -= 128
    return P


def _wspec(shape):
    return pl.BlockSpec(shape, lambda *_: (0,) * len(shape))


def _pff2pre_fuse(cur, upr, p, tp):
    Bn, C, P = cur.shape
    tile = pl.BlockSpec((1, C, tp), lambda b, i: (b, 0, i))
    return pl.pallas_call(
        pff2pre_fuse_kernel,
        out_shape=(jax.ShapeDtypeStruct((Bn, C, P), F32),
                   jax.ShapeDtypeStruct((Bn, 2 * C, 1), F32)),
        grid=(Bn, P // tp),
        in_specs=[tile, tile, _wspec((C, C)), _wspec((C, 1)),
                  _wspec((2 * C, 2 * C)), _wspec((2 * C, 1))],
        out_specs=(tile, pl.BlockSpec((1, 2 * C, 1), lambda b, i: (b, 0, 0))),
        compiler_params=pltpu.CompilerParams(
            dimension_semantics=("parallel", "arbitrary")),
    )(cur, upr, p['wu'], p['bu'], p['wca'], p['bca'])


def _pff2nex_fuse(cur, taps, p, tp):
    Bn, C, P = cur.shape
    tile = pl.BlockSpec((1, C, tp), lambda b, i: (b, 0, i))
    tile4 = pl.BlockSpec((1, 4 * C, tp), lambda b, i: (b, 0, i))
    return pl.pallas_call(
        pff2nex_fuse_kernel,
        out_shape=(jax.ShapeDtypeStruct((Bn, C, P), F32),
                   jax.ShapeDtypeStruct((Bn, 2 * C, 1), F32)),
        grid=(Bn, P // tp),
        in_specs=[tile, tile4, _wspec((C, 4 * C)), _wspec((C, 1)),
                  _wspec((C, C)), _wspec((C, 1)),
                  _wspec((2 * C, 2 * C)), _wspec((2 * C, 1))],
        out_specs=(tile, pl.BlockSpec((1, 2 * C, 1), lambda b, i: (b, 0, 0))),
        compiler_params=pltpu.CompilerParams(
            dimension_semantics=("parallel", "arbitrary")),
    )(cur, taps, p['wd1'], p['bd1'], p['wd2'], p['bd2'], p['wca'], p['bca'])


def _pff3_fuse(cur, upr, taps, p, tp):
    Bn, C, P = cur.shape
    tile = pl.BlockSpec((1, C, tp), lambda b, i: (b, 0, i))
    tile4 = pl.BlockSpec((1, 4 * C, tp), lambda b, i: (b, 0, i))
    return pl.pallas_call(
        pff3_fuse_kernel,
        out_shape=(jax.ShapeDtypeStruct((Bn, C, P), F32),
                   jax.ShapeDtypeStruct((Bn, C, P), F32),
                   jax.ShapeDtypeStruct((Bn, 2 * C, 1), F32)),
        grid=(Bn, P // tp),
        in_specs=[tile, tile, tile4,
                  _wspec((C, 4 * C)), _wspec((C, 1)),
                  _wspec((C, C)), _wspec((C, 1)),
                  _wspec((C, C)), _wspec((C, 1)),
                  _wspec((2 * C, 2 * C)), _wspec((2 * C, 1))],
        out_specs=(tile, tile,
                   pl.BlockSpec((1, 2 * C, 1), lambda b, i: (b, 0, 0))),
        compiler_params=pltpu.CompilerParams(
            dimension_semantics=("parallel", "arbitrary")),
    )(cur, upr, taps, p['wd1'], p['bd1'], p['wd2'], p['bd2'],
      p['wu'], p['bu'], p['wca'], p['bca'])


def _attend(lo, hi, gate, p, tp):
    Bn, C, P = lo.shape
    tile = pl.BlockSpec((1, C, tp), lambda b, i: (b, 0, i))
    gspec = pl.BlockSpec((1, C, 1), lambda b, i: (b, 0, 0))
    wpa, bpa, wf, bf = p['wpa'], p['bpa'], p['wf'], p['bf']
    return pl.pallas_call(
        attend_kernel,
        out_shape=jax.ShapeDtypeStruct((Bn, C, P), F32),
        grid=(Bn, P // tp),
        in_specs=[tile, tile, gspec, gspec,
                  _wspec((C, C)), _wspec((C, C)),
                  _wspec((C, C)), _wspec((C, C)),
                  _wspec((C, 1)), _wspec((C, 1)),
                  _wspec((C, C)), _wspec((C, C)), _wspec((C, 1))],
        out_specs=tile,
        compiler_params=pltpu.CompilerParams(
            dimension_semantics=("parallel", "parallel")),
    )(lo, hi, gate[:, :C], gate[:, C:],
      wpa[:C, :C], wpa[:C, C:], wpa[C:, :C], wpa[C:, C:],
      bpa[:C], bpa[C:],
      wf[:, :C], wf[:, C:], bf)


# ----------------------------------------------------------------------------
# Per-block forwards (inputs/outputs NCHW; reshapes to (B,C,P) are free)
# ----------------------------------------------------------------------------
def pff2pre_forward(cur_nchw, nex_nchw, p, tile_lanes=512):
    Bn, C, H, W = cur_nchw.shape
    _, _, Hn, Wn = nex_nchw.shape
    P = H * W
    ah = _interp_matrix(Hn)                                   # (H, Hn)
    aw = _interp_matrix(Wn)                                   # (W, Wn)
    upr = _spatial_transform(nex_nchw, ah[None], np.transpose(aw)[None])
    cur = cur_nchw.reshape(Bn, C, P)
    tp = _pick_tp(P, tile_lanes)
    mul, gate = _pff2pre_fuse(cur, upr, p, tp)
    out = _attend(cur, mul, gate, p, tp)
    return out.reshape(Bn, C, H, W)


def pff2nex_forward(pre_nchw, cur_nchw, p, tile_lanes=512):
    Bn, C, H, W = cur_nchw.shape
    P = H * W
    A, Bm = _tap_matrices(H, W)
    taps = _spatial_transform(pre_nchw, A, Bm)                # (B, 4C, P)
    cur = cur_nchw.reshape(Bn, C, P)
    tp = _pick_tp(P, tile_lanes)
    mul, gate = _pff2nex_fuse(cur, taps, p, tp)
    out = _attend(cur, mul, gate, p, tp)
    return out.reshape(Bn, C, H, W)


def pff3_forward(pre_nchw, cur_nchw, nex_nchw, p, tile_lanes=512):
    Bn, C, H, W = cur_nchw.shape
    _, _, Hn, Wn = nex_nchw.shape
    P = H * W
    A, Bm = _tap_matrices(H, W)
    taps = _spatial_transform(pre_nchw, A, Bm)                # (B, 4C, P)
    ah = _interp_matrix(Hn)
    aw = _interp_matrix(Wn)
    upr = _spatial_transform(nex_nchw, ah[None], np.transpose(aw)[None])
    cur = cur_nchw.reshape(Bn, C, P)
    tp = _pick_tp(P, tile_lanes)
    mul_low, mul_high, gate = _pff3_fuse(cur, upr, taps, p, tp)
    out = _attend(mul_low, mul_high, gate, p, tp)
    return out.reshape(Bn, C, H, W)


def pmc_forward(features_nchw, params, tile_lanes=512):
    """PMC_Modules.forward with the same in-place list-update semantics."""
    feats = list(features_nchw)
    feats[0] = pff2pre_forward(feats[0], feats[1], params['first'], tile_lanes)
    feats[-1] = pff2nex_forward(feats[-2], feats[-1], params['last'], tile_lanes)
    for idx in range(1, len(feats) - 1):
        feats[idx] = pff3_forward(feats[idx - 1], feats[idx], feats[idx + 1],
                                  params['mid'][idx - 1], tile_lanes)
    return feats


# ----------------------------------------------------------------------------
# Independent pure-JAX (XLA) reference for validation
# ----------------------------------------------------------------------------
def _ref_conv1x1(x, w, b):
    y = jnp.einsum('oi,bihw->bohw', w, x, precision=lax.Precision.HIGHEST)
    return y + b.reshape(1, -1, 1, 1)


def _ref_conv2x2s2(x, w4, b):
    Bn, Ci, Hp, Wp = x.shape
    taps = jnp.stack([x[:, :, dy::2, dx::2] for dy in (0, 1) for dx in (0, 1)],
                     axis=1).reshape(Bn, 4 * Ci, Hp // 2, Wp // 2)
    return _ref_conv1x1(taps, w4, b)


def _ref_up2(x, ah, aw):
    return jnp.einsum('Hh,Ww,bchw->bcHW', ah, aw, x,
                      precision=lax.Precision.HIGHEST)


def _ref_dab_final(cc, p):
    m = jnp.mean(cc, axis=(2, 3))                             # (B, 2C)
    ca = jax.nn.sigmoid(
        jnp.einsum('oi,bi->bo', p['wca'], m, precision=lax.Precision.HIGHEST)
        + p['bca'][:, 0])
    sa = jax.nn.sigmoid(m)
    gate = (ca + sa)[:, :, None, None]
    pa = jax.nn.sigmoid(_ref_conv1x1(cc, p['wpa'], p['bpa']))
    att = cc * gate + cc * pa
    out = _ref_conv1x1(att, p['wf'], p['bf'])
    return jnp.maximum(out, 0.0)


def ref_pff2pre(cur, nex, p):
    ah = jnp.asarray(_interp_matrix(nex.shape[2]))
    aw = jnp.asarray(_interp_matrix(nex.shape[3]))
    up = _ref_up2(_ref_conv1x1(nex, p['wu'], p['bu']), ah, aw)
    cc = jnp.concatenate([cur, cur * up], axis=1)
    return _ref_dab_final(cc, p)


def ref_pff2nex(pre, cur, p):
    down = _ref_conv1x1(_ref_conv2x2s2(pre, p['wd1'], p['bd1']),
                        p['wd2'], p['bd2'])
    cc = jnp.concatenate([cur, down * cur], axis=1)
    return _ref_dab_final(cc, p)


def ref_pff3(pre, cur, nex, p):
    down = _ref_conv1x1(_ref_conv2x2s2(pre, p['wd1'], p['bd1']),
                        p['wd2'], p['bd2'])
    ah = jnp.asarray(_interp_matrix(nex.shape[2]))
    aw = jnp.asarray(_interp_matrix(nex.shape[3]))
    up = _ref_up2(_ref_conv1x1(nex, p['wu'], p['bu']), ah, aw)
    cc = jnp.concatenate([down * cur, up * cur], axis=1)
    return _ref_dab_final(cc, p)


def ref_pmc(features, params):
    feats = list(features)
    feats[0] = ref_pff2pre(feats[0], feats[1], params['first'])
    feats[-1] = ref_pff2nex(feats[-2], feats[-1], params['last'])
    for idx in range(1, len(feats) - 1):
        feats[idx] = ref_pff3(feats[idx - 1], feats[idx], feats[idx + 1],
                              params['mid'][idx - 1])
    return feats


# ----------------------------------------------------------------------------
# Deterministic synthetic parameters (weights in (out, in) layout; biases (out,1))
# ----------------------------------------------------------------------------
def _lin(key, n_out, n_in):
    kw, kb = jax.random.split(key)
    w = jax.random.normal(kw, (n_out, n_in), F32) * 0.2
    b = jax.random.normal(kb, (n_out, 1), F32) * 0.1
    return w, b


def init_dab_final(key, C):
    k1, k2, k3 = jax.random.split(key, 3)
    wca, bca = _lin(k1, 2 * C, 2 * C)     # DAB ca_dense
    wpa, bpa = _lin(k2, 2 * C, 2 * C)     # DAB pa_conv (1x1)
    wf, bf = _lin(k3, C, 2 * C)           # final_conv (1x1)
    return dict(wca=wca, bca=bca, wpa=wpa, bpa=bpa, wf=wf, bf=bf)


def init_pff2pre(key, C):
    k1, k2 = jax.random.split(key)
    wu, bu = _lin(k1, C, C)               # up_conv1 (1x1)
    return dict(wu=wu, bu=bu, **init_dab_final(k2, C))


def init_pff2nex(key, C):
    k1, k2, k3 = jax.random.split(key, 3)
    wd1, bd1 = _lin(k1, C, 4 * C)         # down_conv1 (2x2 s2), cols = k*C + cin
    wd2, bd2 = _lin(k2, C, C)             # down_conv2 (1x1)
    return dict(wd1=wd1, bd1=bd1, wd2=wd2, bd2=bd2, **init_dab_final(k3, C))


def init_pff3(key, C):
    k1, k2, k3, k4 = jax.random.split(key, 4)
    wd1, bd1 = _lin(k1, C, 4 * C)
    wd2, bd2 = _lin(k2, C, C)
    wu, bu = _lin(k3, C, C)
    return dict(wd1=wd1, bd1=bd1, wd2=wd2, bd2=bd2, wu=wu, bu=bu,
                **init_dab_final(k4, C))


def init_params(key, in_channels_list):
    n_mid = len(in_channels_list) - 2
    keys = jax.random.split(key, 2 + max(n_mid, 1))
    return dict(
        first=init_pff2pre(keys[0], in_channels_list[0]),
        last=init_pff2nex(keys[1], in_channels_list[-1]),
        mid=[init_pff3(keys[2 + i], c)
             for i, c in enumerate(in_channels_list[1:-1])])


# ----------------------------------------------------------------------------
if __name__ == "__main__":
    key = jax.random.PRNGKey(0)
    # The PyTorch forward only type-checks when all levels share a channel count.
    in_channels_list = [4, 4, 4]
    batch = 2
    spatial = [16, 8, 4]   # pyramid: each level halves H, W

    kfeat, kparam = jax.random.split(key)
    fkeys = jax.random.split(kfeat, len(in_channels_list))
    features = [
        jax.random.normal(fkeys[i], (batch, in_channels_list[i], s, s), F32)
        for i, s in enumerate(spatial)
    ]
    params = init_params(kparam, in_channels_list)

    # tile_lanes=128 so the 16x16 level exercises the multi-tile pipelined path
    # (including the cross-tile average-pool reduction); larger tiles are better
    # for realistic feature-map sizes.
    outs = pmc_forward(features, params, tile_lanes=128)
    outs = [jax.block_until_ready(o) for o in outs]

    refs = ref_pmc(features, params)
    for o, r in zip(outs, refs):
        np.testing.assert_allclose(np.asarray(o), np.asarray(r),
                                   rtol=1e-3, atol=1e-3)

    print("KERNEL_OK")
</pallas_src>

<mosaic_0001>
module attributes {stable_mosaic.version = 11 : i64} {
  func.func @_spatial_transform_kernel(%arg0: i32, %arg1: memref<1x4x8x8xf32, #tpu.memory_space<vmem>>, %arg2: memref<1x16x8xf32, #tpu.memory_space<vmem>>, %arg3: memref<1x8x16xf32, #tpu.memory_space<vmem>>, %arg4: memref<1x1x4x16x16xf32, #tpu.memory_space<vmem>>) attributes {dimension_semantics = [#tpu.dimension_semantics<parallel>], iteration_bounds = array<i64: 2>, scalar_prefetch = 0 : i64, scratch_operands = 0 : i64, tpu.core_type = #tpu.core_type<tc>, window_params = [{transform_indices = @transform_0, window_bounds = array<i64: 1, 4, 8, 8>}, {pipeline_mode = #tpu.pipeline_mode<synchronous>, transform_indices = @transform_1, window_bounds = array<i64: 1, 16, 8>}, {pipeline_mode = #tpu.pipeline_mode<synchronous>, transform_indices = @transform_2, window_bounds = array<i64: 1, 8, 16>}, {transform_indices = @transform_3, window_bounds = array<i64: 1, 1, 4, 16, 16>}]} {
    %c0 = arith.constant 0 : index
    %c0_0 = arith.constant 0 : index
    %c0_1 = arith.constant 0 : index
    %0 = vector.load %arg2[%c0, %c0_0, %c0_1] : memref<1x16x8xf32, #tpu.memory_space<vmem>>, vector<1x16x8xf32>
    %1 = vector.shape_cast %0 : vector<1x16x8xf32> to vector<16x8xf32>
    %c0_2 = arith.constant 0 : index
    %c0_3 = arith.constant 0 : index
    %c0_4 = arith.constant 0 : index
    %2 = vector.load %arg3[%c0_2, %c0_3, %c0_4] : memref<1x8x16xf32, #tpu.memory_space<vmem>>, vector<1x8x16xf32>
    %3 = vector.shape_cast %2 : vector<1x8x16xf32> to vector<8x16xf32>
    %c0_5 = arith.constant 0 : index
    %c0_6 = arith.constant 0 : index
    %c0_7 = arith.constant 0 : index
    %c0_8 = arith.constant 0 : index
    %4 = vector.load %arg1[%c0_5, %c0_6, %c0_7, %c0_8] : memref<1x4x8x8xf32, #tpu.memory_space<vmem>>, vector<1x1x8x8xf32>
    %5 = vector.shape_cast %4 : vector<1x1x8x8xf32> to vector<8x8xf32>
    %cst = arith.constant dense<0.000000e+00> : vector<16x8xf32>
    %6 = tpu.matmul %1, %5, %cst {dimension_numbers = #tpu.dot_dimension_numbers<[1], [0], [0], [1], [0, 0, 1, 1], [], []>} : vector<16x8xf32>, vector<8x8xf32>, vector<16x8xf32> -> vector<16x8xf32>
    %cst_9 = arith.constant dense<0.000000e+00> : vector<16x16xf32>
    %7 = tpu.matmul %6, %3, %cst_9 {dimension_numbers = #tpu.dot_dimension_numbers<[1], [0], [0], [1], [0, 0, 1, 1], [], []>} : vector<16x8xf32>, vector<8x16xf32>, vector<16x16xf32> -> vector<16x16xf32>
    %c0_10 = arith.constant 0 : index
    %c0_11 = arith.constant 0 : index
    %c0_12 = arith.constant 0 : index
    %c0_13 = arith.constant 0 : index
    %c0_14 = arith.constant 0 : index
    %8 = vector.load %arg4[%c0_10, %c0_11, %c0_12, %c0_13, %c0_14] : memref<1x1x4x16x16xf32, #tpu.memory_space<vmem>>, vector<1x1x1x16x16xf32>
    %9 = vector.shape_cast %8 : vector<1x1x1x16x16xf32> to vector<16x16xf32>
    %10 = vector.shape_cast %7 : vector<16x16xf32> to vector<1x1x1x16x16xf32>
    tpu.vector_store %arg4[%c0_10, %c0_11, %c0_12, %c0_13, %c0_14], %10 {strides = array<i32>} : memref<1x1x4x16x16xf32, #tpu.memory_space<vmem>>, vector<1x1x1x16x16xf32>,
    %c0_15 = arith.constant 0 : index
    %c1 = arith.constant 1 : index
    %c0_16 = arith.constant 0 : index
    %c0_17 = arith.constant 0 : index
    %11 = vector.load %arg1[%c0_15, %c1, %c0_16, %c0_17] : memref<1x4x8x8xf32, #tpu.memory_space<vmem>>, vector<1x1x8x8xf32>
    %12 = vector.shape_cast %11 : vector<1x1x8x8xf32> to vector<8x8xf32>
    %cst_18 = arith.constant dense<0.000000e+00> : vector<16x8xf32>
    %13 = tpu.matmul %1, %12, %cst_18 {dimension_numbers = #tpu.dot_dimension_numbers<[1], [0], [0], [1], [0, 0, 1, 1], [], []>} : vector<16x8xf32>, vector<8x8xf32>, vector<16x8xf32> -> vector<16x8xf32>
    %cst_19 = arith.constant dense<0.000000e+00> : vector<16x16xf32>
    %14 = tpu.matmul %13, %3, %cst_19 {dimension_numbers = #tpu.dot_dimension_numbers<[1], [0], [0], [1], [0, 0, 1, 1], [], []>} : vector<16x8xf32>, vector<8x16xf32>, vector<16x16xf32> -> vector<16x16xf32>
    %c0_20 = arith.constant 0 : index
    %c0_21 = arith.constant 0 : index
    %c1_22 = arith.constant 1 : index
    %c0_23 = arith.constant 0 : index
    %c0_24 = arith.constant 0 : index
    %15 = vector.load %arg4[%c0_20, %c0_21, %c1_22, %c0_23, %c0_24] : memref<1x1x4x16x16xf32, #tpu.memory_space<vmem>>, vector<1x1x1x16x16xf32>
    %16 = vector.shape_cast %15 : vector<1x1x1x16x16xf32> to vector<16x16xf32>
    %17 = vector.shape_cast %14 : vector<16x16xf32> to vector<1x1x1x16x16xf32>
    tpu.vector_store %arg4[%c0_20, %c0_21, %c1_22, %c0_23, %c0_24], %17 {strides = array<i32>} : memref<1x1x4x16x16xf32, #tpu.memory_space<vmem>>, vector<1x1x1x16x16xf32>,
    %c0_25 = arith.constant 0 : index
    %c2 = arith.constant 2 : index
    %c0_26 = arith.constant 0 : index
    %c0_27 = arith.constant 0 : index
    %18 = vector.load %arg1[%c0_25, %c2, %c0_26, %c0_27] : memref<1x4x8x8xf32, #tpu.memory_space<vmem>>, vector<1x1x8x8xf32>
    %19 = vector.shape_cast %18 : vector<1x1x8x8xf32> to vector<8x8xf32>
    %cst_28 = arith.constant dense<0.000000e+00> : vector<16x8xf32>
    %20 = tpu.matmul %1, %19, %cst_28 {dimension_numbers = #tpu.dot_dimension_numbers<[1], [0], [0], [1], [0, 0, 1, 1], [], []>} : vector<16x8xf32>, vector<8x8xf32>, vector<16x8xf32> -> vector<16x8xf32>
    %cst_29 = arith.constant dense<0.000000e+00> : vector<16x16xf32>
    %21 = tpu.matmul %20, %3, %cst_29 {dimension_numbers = #tpu.dot_dimension_numbers<[1], [0], [0], [1], [0, 0, 1, 1], [], []>} : vector<16x8xf32>, vector<8x16xf32>, vector<16x16xf32> -> vector<16x16xf32>
    %c0_30 = arith.constant 0 : index
    %c0_31 = arith.constant 0 : index
    %c2_32 = arith.constant 2 : index
    %c0_33 = arith.constant 0 : index
    %c0_34 = arith.constant 0 : index
    %22 = vector.load %arg4[%c0_30, %c0_31, %c2_32, %c0_33, %c0_34] : memref<1x1x4x16x16xf32, #tpu.memory_space<vmem>>, vector<1x1x1x16x16xf32>
    %23 = vector.shape_cast %22 : vector<1x1x1x16x16xf32> to vector<16x16xf32>
    %24 = vector.shape_cast %21 : vector<16x16xf32> to vector<1x1x1x16x16xf32>
    tpu.vector_store %arg4[%c0_30, %c0_31, %c2_32, %c0_33, %c0_34], %24 {strides = array<i32>} : memref<1x1x4x16x16xf32, #tpu.memory_space<vmem>>, vector<1x1x1x16x16xf32>,
    %c0_35 = arith.constant 0 : index
    %c3 = arith.constant 3 : index
    %c0_36 = arith.constant 0 : index
    %c0_37 = arith.constant 0 : index
    %25 = vector.load %arg1[%c0_35, %c3, %c0_36, %c0_37] : memref<1x4x8x8xf32, #tpu.memory_space<vmem>>, vector<1x1x8x8xf32>
    %26 = vector.shape_cast %25 : vector<1x1x8x8xf32> to vector<8x8xf32>
    %cst_38 = arith.constant dense<0.000000e+00> : vector<16x8xf32>
    %27 = tpu.matmul %1, %26, %cst_38 {dimension_numbers = #tpu.dot_dimension_numbers<[1], [0], [0], [1], [0, 0, 1, 1], [], []>} : vector<16x8xf32>, vector<8x8xf32>, vector<16x8xf32> -> vector<16x8xf32>
    %cst_39 = arith.constant dense<0.000000e+00> : vector<16x16xf32>
    %28 = tpu.matmul %27, %3, %cst_39 {dimension_numbers = #tpu.dot_dimension_numbers<[1], [0], [0], [1], [0, 0, 1, 1], [], []>} : vector<16x8xf32>, vector<8x16xf32>, vector<16x16xf32> -> vector<16x16xf32>
    %c0_40 = arith.constant 0 : index
    %c0_41 = arith.constant 0 : index
    %c3_42 = arith.constant 3 : index
    %c0_43 = arith.constant 0 : index
    %c0_44 = arith.constant 0 : index
    %29 = vector.load %arg4[%c0_40, %c0_41, %c3_42, %c0_43, %c0_44] : memref<1x1x4x16x16xf32, #tpu.memory_space<vmem>>, vector<1x1x1x16x16xf32>
    %30 = vector.shape_cast %29 : vector<1x1x1x16x16xf32> to vector<16x16xf32>
    %31 = vector.shape_cast %28 : vector<16x16xf32> to vector<1x1x1x16x16xf32>
    tpu.vector_store %arg4[%c0_40, %c0_41, %c3_42, %c0_43, %c0_44], %31 {strides = array<i32>} : memref<1x1x4x16x16xf32, #tpu.memory_space<vmem>>, vector<1x1x1x16x16xf32>,
    return
  }
  func.func @transform_0(%arg0: i32) -> (i32, i32, i32, i32) {
    %c0_i32 = arith.constant 0 : i32
    %c0_i32_0 = arith.constant 0 : i32
    %c0_i32_1 = arith.constant 0 : i32
    %c0_i32_2 = arith.constant 0 : i32
    return %arg0, %c0_i32, %c0_i32_0, %c0_i32_1 : i32, i32, i32, i32
  }
  func.func @transform_1(%arg0: i32) -> (i32, i32, i32) {
    %c0_i32 = arith.constant 0 : i32
    %c0_i32_0 = arith.constant 0 : i32
    %c0_i32_1 = arith.constant 0 : i32
    %c0_i32_2 = arith.constant 0 : i32
    return %c0_i32, %c0_i32_0, %c0_i32_1 : i32, i32, i32
  }
  func.func @transform_2(%arg0: i32) -> (i32, i32, i32) {
    %c0_i32 = arith.constant 0 : i32
    %c0_i32_0 = arith.constant 0 : i32
    %c0_i32_1 = arith.constant 0 : i32
    %c0_i32_2 = arith.constant 0 : i32
    return %c0_i32, %c0_i32_0, %c0_i32_1 : i32, i32, i32
  }
  func.func @transform_3(%arg0: i32) -> (i32, i32, i32, i32, i32) {
    %c0_i32 = arith.constant 0 : i32
    %c0_i32_0 = arith.constant 0 : i32
    %c0_i32_1 = arith.constant 0 : i32
    %c0_i32_2 = arith.constant 0 : i32
    %c0_i32_3 = arith.constant 0 : i32
    return %arg0, %c0_i32, %c0_i32_0, %c0_i32_1, %c0_i32_2 : i32, i32, i32, i32, i32
  }
}

</mosaic_0001>

<bundles_post_ra>
// kernel: tpu_custom_call.1
= control target key start
LH: loop header
LB: loop body
LE: loop exit
PB: predicated region body
PF: predicated region fallthrough
CT: control target
= control target key end

     0   :  { %8 = vsyncpa [#allocation3], 0  ;;  %s1404_s0 = inlined_call_operand.hbm [shape: f32[2,4,8,8], index: 0, kind: input, shape index: {}]   ;;  %s1405_s1 = inlined_call_operand.vmem [shape: f32[1,16,8], index: 1, kind: input, shape index: {}]   ;;  %s1406_s2 = inlined_call_operand.vmem [shape: f32[1,8,16], index: 2, kind: input, shape index: {}]   ;;  %s1407_s3 = inlined_call_operand.hbm [shape: f32[2,1,4,16,16], index: 3, kind: output, shape index: {}]  }
   0x1   :  { %10 = vsyncpa [#allocation3 + $0x1], 0 }
   0x2   :  { %11 = vsyncpa [#allocation4], 0 }
   0x3   :  { %13 = vsyncpa [#allocation4 + $0x1], 0  ;;  %s1208_s12 = smov 0   ;;  %s1210_s13 = smov 0  }
   0x4   :  { %s1212_s14 = smov 0   ;;  %s1214_s15 = smov 0  }
   0x5 LB: > { %s1229_s16 = sadd.s32 4294967295, %s1180_s15   ;;  %s929_s17 = sadd.s32 4294967294, %s1180_s15   ;;  %s1180_s15 = sphi %s1214_s15, %s1420_s15   ;;  %s1176_s14 = sphi %s1212_s14, %s1419_s14   ;;  %s1172_s13 = sphi %s1210_s13, %s1418_s13   ;;  %s1168_s12 = sphi %s1208_s12, %s1417_s12  }
   0x6   : > { %s1233_s18 = sadd.s32 1, %s1180_s15   ;;  %s26_s19 = sadd.s32 1, %s1176_s14 }
   0x7   : > { %s23_s20 = ssub.s32 %s1180_s15, %s1233_s18  ;;  %p33_p0 = scmp.ne.s32.totalorder %s1176_s14, %s1172_s13 }
   0x8   : > { %p24_p1 = scmp.eq.s32.totalorder %s23_s20, 0  ;;  %p34_p2 = scmp.eq.s32.totalorder %s1180_s15, 0 }
   0x9   : > { %p39_p3 = scmp.ne.s32.totalorder %s1172_s13, %s1168_s12  ;;  %p40_p4 = scmp.eq.s32.totalorder %s1229_s16, 0 }
   0xa   : > { %s1245_s21 = scalar_select %p24_p1, %s1176_s14, %s26_s19  }
   0xb   : > { %p1247_p5 = por %p34_p2, %p33_p0  ;;  %p1251_p6 = por %p40_p4, %p39_p3 }
   0xc   : > { %p105_p7 = scmp.eq.s32.totalorder %s1229_s16, 1  ;;  %p111_p8 = scmp.eq.s32.totalorder %s929_s17, 1 }
   0xd   : > { %p1046_p10 = scmp.lt.s32.totalorder %s1180_s15, 2  ;;  %s137_s26 = sand.u32 1, %s1176_s14  }
   0xe   : > { %p1258_p11 = por %p105_p7, %p33_p0  ;;  %p1262_p12 = por %p111_p8, %p39_p3 }
   0xf   : > { %s968_s27 = sshll.u32 %s1180_s15, 9  ;;  %s932_s28 = sshll.u32 %s137_s26, 5 }
  0x10   : > { %s1411_s24 = scalar_select %p1258_p11, 1, 0 }
  0x11   : > { %s1412_s25 = scalar_select %p1262_p12, 1, 0 }
  0x12   : > { %s1271_s4 = scalar_lea.hbm %s1404_s0, %s968_s27  ;;  %s141_s5 = scalar_lea.vmem [#allocation2], %s932_s28 }
  0x13   : > { %s148_s6 = sshll.u32 %s141_s5, 4  ;;  %p1275_p13 = pnand %p1046_p10, %p1247_p5  ;;  %s1279_s6 = int_to_ptr.vmem [resolvable:$true] %s148_s6 }
  0x14   : > { %s1281_s8 = scalar_lea.sflag [#allocation3], %s137_s26  ;;  %s1084_s9 = scalar_lea.hbm %s1271_s4, 512 }
  0x15   : > { %p1085_p0 = scmp.ne.s32.totalorder %s1271_s4, %s1084_s9  ;;  %p1086_p1 = pneg %p1275_p13 }
  0x16   : > { %s1089_s17 = scalar_lea.hbm %s1404_s0, 1024  ;;  %p1090_p4 = scmp.lt.u32.totalorder %s1271_s4, %s1404_s0 }
  0x17   : > { %p1087_p2 = pnand %p1086_p1, %p1085_p0  ;;  %p1091_p5 = scmp.lt.u32.totalorder %s1089_s17, %s1084_s9 }
  0x18   : > { %p1093_p8 = scmp.lt.u32.totalorder %s1084_s9, %s1271_s4 }
  0x19   : > { %p1088_p3 = pneg %p1087_p2  ;;  %p1092_p7 = por %p1091_p5, %p1090_p4 }
  0x1b   : > { %p1094_p10 = por %p1093_p8, %p1092_p7 }
  0x1d   : > { %p1095_p9 = pnand %p1094_p10, %p1088_p3 }
  0x1f   : > { %1098 = shalt.err (!%p1095_p9)
}
  0x20   : > { %s1099_s22 = scalar_lea.vmem %s1279_s6, 512  ;;  %s1182_s26 = smov [#allocation2]  }
  0x21   : > { %p1100_p0 = scmp.ne.s32.totalorder %s1279_s6, %s1099_s22  ;;  %s1104_s27 = sshll.u32 %s1182_s26, 4  ;;  %s1105_s27 = int_to_ptr.vmem [resolvable:$false] %s1104_s27 }
  0x22   : > { %s1106_s28 = scalar_lea.vmem %s1105_s27, 1024  ;;  %p1107_p11 = scmp.lt.s32.totalorder %s1279_s6, %s1105_s27 }
  0x23   : > { %p1102_p2 = pnand %p1100_p0, %p1086_p1  ;;  %p1108_p4 = scmp.lt.s32.totalorder %s1106_s28, %s1099_s22 }
  0x25   : > { %p1103_p12 = pneg %p1102_p2  ;;  %p1109_p5 = por %p1108_p4, %p1107_p11 }
  0x27   : > { %p1110_p7 = pnand %p1109_p5, %p1103_p12 }
  0x29   : > { %1113 = shalt.err (!%p1110_p7)
}
  0x2a   : > { %s1183_s29 = smov 128   ;;  %s1184_s30 = smov 8  }
  0x2b   : > { %1041 = dma.hbm_to_vmem [thread:$0]  (!%p1275_p13), %s1271_s4, 512, %s1279_s6, %s1281_s8, %s1183_s29, %s1183_s29, %s1184_s30  }
  0x2c   : > { %p935_p9 = scmp.ge.s32.totalorder %s1180_s15, 1  ;;  %p156_p1 = scmp.lt.s32.totalorder %s1180_s15, 3 }
  0x2e   : > { %p157_p3 = pnand %p935_p9, %p156_p1 }
  0x2f   : > { %s1312_s5 = sand.u32 (!%p157_p3), 1, %s1172_s13  }
  0x30   : > { %160 = sbr.rel (%p157_p3) target bundleno = 513 (0x201), region = 32  ;;  %s936_s9 = sshll.u32 (!%p157_p3), %s1312_s5, 5 }
  0x31   : > { %s163_s10 = scalar_lea.sflag (!%p157_p3), [#allocation3], %s1312_s5  ;;  %s166_s11 = scalar_lea.vmem (!%p157_p3), [#allocation2], %s936_s9 }
  0x37   : > { %1159 = dma.done.wait (%p1251_p6), %s163_s10, 512  }
  0x38   : > { %1161 = vsyncadd (%p1251_p6), %s163_s10, 4294966784  ;;  %vm193_vm0 = vcmask 64512   ;;  %v192_v0 = vld [vmem:[%s166_s11] sm:$0xff]  ;;  %v190_v2 = vld [vmem:[%s1405_s1 + $0x8] sm:$0xff]  ;;  %s937_s19 = sshll.u32 %s1312_s5, 6  ;;  %vm356_vm1 = vcmask 130048  }
  0x39   : > { %v189_v1 = vld [vmem:[%s1405_s1] sm:$0xff]  ;;  %994 = vmatprep.subr.mxu0 %v192_v0  ;;  %v942_v3 = vld [vmem:[%s166_s11 + $0x8] sm:$0xff]  ;;  %v949_v4 = vld [vmem:[%s166_s11 + $0x10] sm:$0xff]  ;;  %s188_s20 = scalar_lea.vmem [#allocation5], %s937_s19  ;;  %s969_s26 = sshll.u32 %s1229_s16, 10 }
  0x3a   : > { %996 = vmatprep.mubr.msk.f32.mxu0 %vm193_vm0, %v189_v1  ;;  %995 = vmatpush3.msra.mxu0 %v192_v0  ;;  %v956_v5 = vld [vmem:[%s166_s11 + $0x18] sm:$0xff]  ;;  %v191_v6 = vld [vmem:[%s1406_s2] sm:$0xff]  ;;  %s856_s22 = sshll.u32 %s188_s20, 4  ;;  %s1358_s29 = scalar_lea.hbm %s1407_s3, %s969_s26  ;;  %s1352_s22 = int_to_ptr.vmem [resolvable:$true] %s856_s22 }
  0x3b   : > { %997 = vmatmul.mubr.msk.f32.vlgmr.msra.gmra.mrb[0].mxu0 %vm193_vm0, %v190_v2  ;;  %1004 = vmatprep.subr.mxu0 %v942_v3  ;;  %s843_s16 = scalar_lea.sflag [#allocation4], %s1312_s5  ;;  %s1114_s30 = scalar_lea.vmem %s1352_s22, 1024 }
  0x3c   : > { %1005 = vmatpush3.msra.mxu0 %v942_v3  ;;  %1006 = vmatprep.mubr.msk.f32.mxu0 %vm193_vm0, %v189_v1  ;;  %p1115_p6 = scmp.ne.s32.totalorder %s1352_s22, %s1114_s30  ;;  %p1414_p11 = scmp.ne.s32.totalorder %s1411_s24, 0 }
  0x3d   : > { %1014 = vmatprep.subr.mxu0 %v949_v4  ;;  %999 = vmatprep.subr.mxu1 %v191_v6  ;;  %s1185_s9 = smov [#allocation5]  }
  0x3e   : > { %1000 = vmatpush3.msra.mxu1 %v191_v6  ;;  %p1116_p12 = pnand %p1115_p6, %p1414_p11  ;;  %s1118_s10 = sshll.u32 %s1185_s9, 4  ;;  %s1119_s10 = int_to_ptr.vmem [resolvable:$false] %s1118_s10 }
  0x3f   : > { %1007 = vmatmul.mubr.msk.f32.vlgmr.msra.gmra.mrb[2].mxu0 %vm193_vm0, %v190_v2  ;;  %1009 = vmatprep.subr.mxu1 %v191_v6  ;;  %s1120_s11 = scalar_lea.vmem %s1119_s10, 2048  ;;  %p1121_p8 = scmp.lt.s32.totalorder %s1352_s22, %s1119_s10 }
  0x40   : > { %1015 = vmatpush3.msra.mxu0 %v949_v4  ;;  %1016 = vmatprep.mubr.msk.f32.mxu0 %vm193_vm0, %v189_v1  ;;  %p1117_p13 = pneg %p1116_p12  ;;  %p1122_p10 = scmp.lt.s32.totalorder %s1120_s11, %s1114_s30 }
  0x41   : > { %1024 = vmatprep.subr.mxu0 %v956_v5 }
  0x42   : > { %p1123_p0 = por %p1122_p10, %p1121_p8 }
  0x43   : > { %1017 = vmatmul.mubr.msk.f32.vlgmr.msra.gmra.mrb[4].mxu0 %vm193_vm0, %v190_v2 }
  0x44   : > { %1025 = vmatpush3.msra.mxu0 %v956_v5  ;;  %1026 = vmatprep.mubr.msk.f32.mxu0 %vm193_vm0, %v189_v1  ;;  %p1124_p2 = pnand %p1123_p0, %p1117_p13 }
  0x47   : > { %1027 = vmatmul.mubr.msk.f32.vlgmr.msra.gmra.mrb[6].mxu0 %vm193_vm0, %v190_v2 }
 0x10e   : > { %v998_v7 = vpop.f32.mrb[0].mxu0 }
 0x10f   : > { %v266_v8 = vpop.f32.mrb[1].mxu0 }
 0x110   : > { %1001 = vmatprep.mubr.msk.f32.mxu1 %vm193_vm0, %v266_v8 }
 0x111   : > { %1002 = vmatmul.mubr.msk.f32.vlgmr.msra.gmra.mrb[0].mxu1 %vm193_vm0, %v998_v7 }
 0x112   : > { %v1008_v9 = vpop.f32.mrb[2].mxu0  ;;  %1010 = vmatpush3.msra.mxu1 %v191_v6 }
 0x113   : > { %v427_v10 = vpop.f32.mrb[3].mxu0  ;;  %1019 = vmatprep.subr.mxu1 %v191_v6 }
 0x114   : > { %1011 = vmatprep.mubr.msk.f32.mxu1 %vm193_vm0, %v427_v10 }
 0x115   : > { %1012 = vmatmul.mubr.msk.f32.vlgmr.msra.gmra.mrb[2].mxu1 %vm193_vm0, %v1008_v9 }
 0x116   : > { %v1018_v11 = vpop.f32.mrb[4].mxu0  ;;  %1020 = vmatpush3.msra.mxu1 %v191_v6 }
 0x117   : > { %v588_v12 = vpop.f32.mrb[5].mxu0  ;;  %1029 = vmatprep.subr.mxu1 %v191_v6 }
 0x118   : > { %1021 = vmatprep.mubr.msk.f32.mxu1 %vm193_vm0, %v588_v12 }
 0x119   : > { %1022 = vmatmul.mubr.msk.f32.vlgmr.msra.gmra.mrb[4].mxu1 %vm193_vm0, %v1018_v11 }
 0x11a   : > { %v1028_v13 = vpop.f32.mrb[6].mxu0  ;;  %1030 = vmatpush3.msra.mxu1 %v191_v6 }
 0x11b   : > { %v749_v14 = vpop.f32.mrb[7].mxu0 }
 0x11c   : > { %1031 = vmatprep.mubr.msk.f32.mxu1 %vm193_vm0, %v749_v14 }
 0x11d   : > { %1032 = vmatmul.mubr.msk.f32.vlgmr.msra.gmra.mrb[6].mxu1 %vm193_vm0, %v1028_v13 }
 0x1e4   : > { %v1003_v15 = vpop.f32.mrb[0].mxu1 }
 0x1e5   : > { %358 = vst.msk [vmem:[%s188_s20 + $0x8] sm:$0xff] %vm356_vm1, %v1003_v15  ;;  %v347_v16 = vpop.f32.mrb[1].mxu1 }
 0x1e6   : > { %357 = vst.msk [vmem:[%s188_s20] sm:$0xff] %vm356_vm1, %v347_v16 }
 0x1e8   : > { %v1013_v17 = vpop.f32.mrb[2].mxu1 }
 0x1e9   : > { %948 = vst.msk [vmem:[%s188_s20 + $0x18] sm:$0xff] %vm356_vm1, %v1013_v17  ;;  %v508_v18 = vpop.f32.mrb[3].mxu1 }
 0x1ea   : > { %947 = vst.msk [vmem:[%s188_s20 + $0x10] sm:$0xff] %vm356_vm1, %v508_v18 }
 0x1ec   : > { %v1023_v19 = vpop.f32.mrb[4].mxu1 }
 0x1ed   : > { %955 = vst.msk [vmem:[%s188_s20 + $0x28] sm:$0xff] %vm356_vm1, %v1023_v19  ;;  %v669_v20 = vpop.f32.mrb[5].mxu1 }
 0x1ee   : > { %954 = vst.msk [vmem:[%s188_s20 + $0x20] sm:$0xff] %vm356_vm1, %v669_v20 }
 0x1f0   : > { %v1033_v21 = vpop.f32.mrb[6].mxu1 }
 0x1f1   : > { %962 = vst.msk [vmem:[%s188_s20 + $0x38] sm:$0xff] %vm356_vm1, %v1033_v21  ;;  %v830_v22 = vpop.f32.mrb[7].mxu1 }
 0x1f2   : > { %961 = vst.msk [vmem:[%s188_s20 + $0x30] sm:$0xff] %vm356_vm1, %v830_v22 }
 0x1f3   : > { %1127 = shalt.err (!%p1124_p2)
}
 0x1f4   : > { %s1128_s4 = scalar_lea.hbm %s1358_s29, 1024  ;;  %s1132_s8 = scalar_lea.hbm %s1407_s3, 2048 }
 0x1f5   : > { %p1129_p4 = scmp.ne.s32.totalorder %s1358_s29, %s1128_s4  ;;  %p1133_p9 = scmp.lt.u32.totalorder %s1358_s29, %s1407_s3 }
 0x1f6   : > { %p1134_p1 = scmp.lt.u32.totalorder %s1132_s8, %s1128_s4  ;;  %p1136_p6 = scmp.lt.u32.totalorder %s1128_s4, %s1358_s29 }
 0x1f7   : > { %p1130_p5 = pnand %p1129_p4, %p1414_p11 }
 0x1f8   : > { %p1135_p3 = por %p1134_p1, %p1133_p9 }
 0x1f9   : > { %p1131_p7 = pneg %p1130_p5 }
 0x1fa   : > { %p1137_p12 = por %p1136_p6, %p1135_p3 }
 0x1fc   : > { %p1138_p13 = pnand %p1137_p12, %p1131_p7 }
 0x1fe   : > { %1141 = shalt.err (!%p1138_p13)
}
 0x1ff   : > { %s1186_s19 = smov 128   ;;  %s1187_s20 = smov 8  }
 0x200   : > { %1036 = dma.vmem_to_hbm [thread:$0]  (%p1414_p11), %s1352_s22, 1024, %s1358_s29, %s843_s16, %s1186_s19, %s1186_s19, %s1187_s20  }
 0x201 PF: > { %s871_s26 = sand.u32 1, %s1168_s12   ;;  %p1415_p8 = scmp.ne.s32.totalorder %s1412_s25, 0 }
 0x202   : > { %p1416_p10 = scmp.ge.s32.totalorder %s1180_s15, 2  ;;  %s872_s27 = scalar_lea.sflag [#allocation4], %s871_s26 }
 0x204   : > { %p1043_p0 = pnand %p1416_p10, %p1415_p8 }
 0x206   : > { %1163 = dma.done.wait (!%p1043_p0), %s872_s27, 1024  }
 0x207   : > { %1165 = vsyncadd (!%p1043_p0), %s872_s27, 4294966272  ;;  %p16_p2 = scmp.ge.s32.totalorder %s1233_s18, 4   ;;  %s1417_s12 = smov %s1172_s13 }
 0x208   : > { %s1418_s13 = smov %s1176_s14  ;;  %s1419_s14 = smov %s1245_s21 }
 0x209   : > { %s1420_s15 = smov %s1233_s18  ;;  %18 = sbr.rel (!%p16_p2) target bundleno = 5 (0x5), region = 83 }
 0x210   :  { %877 = vsyncpa [#allocation3], 1 }
 0x211   :  { %879 = vsyncpa [#allocation3 + $0x1], 1 }
 0x212   :  { %880 = vsyncpa [#allocation4], 1 }
 0x213   :  { %882 = vsyncpa [#allocation4 + $0x1], 1 }

</bundles_post_ra>
